<compile_context>
chip_gen: v5e
topology: v5e:2x2
jax: 0.10.0
libtpu: 0.0.40
codegen_flags: <defaults>
</compile_context>

<pallas_src>
import functools

import jax
import jax.numpy as jnp
from jax import lax
from jax.experimental import pallas as pl
from jax.experimental.pallas import tpu as pltpu


# Safe-everywhere fallback if the hardware query is unavailable.
_FALLBACK_VMEM_LIMIT = 32 * 1024 * 1024
# Never shrink the token tile below this just to dodge one ragged edge block.
_MIN_DIVISOR_TILE = 1024


def _vmem_limit_bytes():
    """Generation-aware scoped-VMEM target (~75% of physical per-core VMEM).

    v5e/v6e (128 MiB) -> ~96 MiB; v7x (64 MiB/TC) -> ~48 MiB.
    """
    try:
        cap = int(pltpu.get_tpu_info().vmem_capacity_bytes)
        return max(_FALLBACK_VMEM_LIMIT, (3 * cap) // 4)
    except Exception:  # non-TPU backend / older jax: stay conservative
        return _FALLBACK_VMEM_LIMIT


def _mlp_proj_kernel(x_ref, w_ref, b_ref, o_ref):
    # x_ref: (C, tn) slab of the NCHW input (channels on sublanes, tokens on lanes)
    # w_ref: (C, E)   resident weight
    # b_ref: (1, E)   bias row
    # o_ref: (tn, E)  output tile (tokens on sublanes, embed on lanes)
    acc = lax.dot_general(
        x_ref[...],
        w_ref[...],
        dimension_numbers=(((0,), (0,)), ((), ())),  # contract C with C (trans_a)
        preferred_element_type=jnp.float32,
    )
    o_ref[...] = (acc + b_ref[...].astype(jnp.float32)).astype(o_ref.dtype)


def _choose_token_tile(HW, C, E, itemsize, vmem_limit, n_batch):
    """Largest lane-aligned token tile that fits the VMEM budget."""
    # Resident (non-token-streamed) VMEM: weight + bias, double-buffered by
    # default by the pipeline.
    # TODO(synk): pipeline_mode=pl.Buffered(1) on the constant-index weight /
    # bias specs would return ~half of this to the token budget on v7x.
    resident = 2 * (C * E + E) * itemsize
    # ~20% headroom for compiler scratch / semaphores / small temporaries.
    tile_budget = int(0.8 * vmem_limit) - resident
    # Per-token VMEM cost:
    #   2*(C+E)*itemsize : double-buffered x / out streams
    #   4*E              : f32 dot_general accumulator (dtype-independent)
    #   itemsize*C       : headroom for a possible lhs retile inside the dot
    per_token = 2 * (C + E) * itemsize + 4 * E + itemsize * C
    cap = max(128, tile_budget // per_token)

    if HW <= cap:
        tn = HW  # one full-spatial tile per image
    else:
        tn = (cap // 128) * 128  # lane-aligned
        # Prefer a tile that divides HW evenly (avoids a clipped edge block),
        # but never shrink below _MIN_DIVISOR_TILE tokens to do so.
        floor = min(tn, max(_MIN_DIVISOR_TILE, 128))
        for cand in range(tn, floor - 1, -128):
            if HW % cand == 0:
                tn = cand
                break

    # Guarantee >= 2 grid blocks so a 2-TensorCore chip (v7x) can shard the
    # "parallel" axes; costs one extra (still large) grid step on 1-TC chips.
    if n_batch == 1 and tn >= HW and HW >= 256:
        half = ((pl.cdiv(HW, 2) + 127) // 128) * 128
        tn = min(tn, half)
    return tn


@functools.partial(jax.jit, static_argnames=("compute_dtype",))
def mlp_forward(x_nchw, weight, bias, *, compute_dtype=None):
    """SegFormer MLP head forward.

    x_nchw        : (B, C, H, W)
    weight        : (C, E)  (torch's nn.Linear weight is (E, C); stored transposed)
    bias          : (E,)
    compute_dtype : optional streaming dtype (e.g. jnp.bfloat16) for x/weight;
                    accumulation stays f32, output follows the streaming dtype.
    returns       : (B, H*W, E)
    """
    B, C, H, W = x_nchw.shape
    E = weight.shape[1]
    HW = H * W
    M = B * HW

    if compute_dtype is not None:
        cdt = jnp.dtype(compute_dtype)
        x_nchw = x_nchw.astype(cdt)
        weight = weight.astype(cdt)
        bias = bias.astype(cdt)
    out_dtype = x_nchw.dtype
    itemsize = jnp.dtype(out_dtype).itemsize

    # Pure reshape (no data movement): keep the native channel-major layout;
    # the token-major transpose is fused into the kernel's dot_general.
    x_flat = x_nchw.reshape(B, C, HW)
    bias2d = bias.reshape(1, E)

    vmem_limit = _vmem_limit_bytes()
    tn = _choose_token_tile(HW, C, E, itemsize, vmem_limit, B)
    grid = (B, pl.cdiv(HW, tn))

    cost = pl.CostEstimate(
        flops=2 * M * C * E,
        transcendentals=0,
        bytes_accessed=itemsize * (M * C + M * E + C * E + E),
    )

    out = pl.pallas_call(
        _mlp_proj_kernel,
        out_shape=jax.ShapeDtypeStruct((B, HW, E), out_dtype),
        grid=grid,
        in_specs=[
            # Lane-dense (C, tn) slab straight out of the NCHW tensor.
            pl.BlockSpec((None, C, tn), lambda b, j: (b, 0, j)),
            # Full weight / bias, constant index -> resident, no per-step DMA.
            pl.BlockSpec((C, E), lambda b, j: (0, 0)),
            pl.BlockSpec((1, E), lambda b, j: (0, 0)),
        ],
        out_specs=pl.BlockSpec((None, tn, E), lambda b, j: (b, j, 0)),
        compiler_params=pltpu.CompilerParams(
            dimension_semantics=("parallel", "parallel"),
            vmem_limit_bytes=vmem_limit,
        ),
        cost_estimate=cost,
    )(x_flat, weight, bias2d)

    return out


if __name__ == "__main__":
    # Small shapes consistent with the module: input_dim = C, embed_dim = E.
    # E is a multiple of 128 so the output stores are lane-dense.
    B, C, H, W = 2, 32, 16, 16
    E = 128

    key = jax.random.PRNGKey(0)
    kx, kw, kb = jax.random.split(key, 3)

    x = jax.random.normal(kx, (B, C, H, W), dtype=jnp.float32)
    # torch nn.Linear weight is (E, C); we store it transposed as (C, E).
    weight = jax.random.normal(kw, (C, E), dtype=jnp.float32) * 0.02
    bias = jax.random.normal(kb, (E,), dtype=jnp.float32) * 0.02

    # Pure-JAX reference of the forward semantics: flatten(2).transpose(1,2) @ W + b
    ref = jnp.transpose(x.reshape(B, C, H * W), (0, 2, 1)) @ weight + bias

    # f32 path (exact semantics of the PyTorch module).
    y = mlp_forward(x, weight, bias)
    jax.block_until_ready(y)
    assert y.shape == (B, H * W, E)
    assert jnp.allclose(y, ref, atol=1e-4, rtol=1e-4), float(jnp.max(jnp.abs(y - ref)))

    # bf16 streaming path (halves HBM bytes; f32 accumulation inside).
    y_bf16 = mlp_forward(x, weight, bias, compute_dtype=jnp.bfloat16)
    jax.block_until_ready(y_bf16)
    assert y_bf16.shape == (B, H * W, E)
    assert jnp.allclose(y_bf16.astype(jnp.float32), ref, atol=5e-2, rtol=5e-2)

    print("KERNEL_OK")
</pallas_src>

<mosaic_0001>
module attributes {stable_mosaic.version = 11 : i64} {
  func.func @_mlp_proj_kernel(%arg0: i32, %arg1: i32, %arg2: memref<1x32x256xf32, #tpu.memory_space<vmem>>, %arg3: memref<32x128xf32, #tpu.memory_space<vmem>>, %arg4: memref<1x128xf32, #tpu.memory_space<vmem>>, %arg5: memref<1x256x128xf32, #tpu.memory_space<vmem>>) attributes {dimension_semantics = [#tpu.dimension_semantics<parallel>, #tpu.dimension_semantics<parallel>], iteration_bounds = array<i64: 2, 1>, scalar_prefetch = 0 : i64, scratch_operands = 0 : i64, tpu.core_type = #tpu.core_type<tc>, window_params = [{transform_indices = @transform_0, window_bounds = array<i64: 1, 32, 256>}, {pipeline_mode = #tpu.pipeline_mode<synchronous>, transform_indices = @transform_1, window_bounds = array<i64: 32, 128>}, {pipeline_mode = #tpu.pipeline_mode<synchronous>, transform_indices = @transform_2, window_bounds = array<i64: 1, 128>}, {transform_indices = @transform_3, window_bounds = array<i64: 1, 256, 128>}]} {
    %c0 = arith.constant 0 : index
    %c0_0 = arith.constant 0 : index
    %c0_1 = arith.constant 0 : index
    %0 = vector.load %arg2[%c0, %c0_0, %c0_1] : memref<1x32x256xf32, #tpu.memory_space<vmem>>, vector<1x32x256xf32>
    %1 = vector.shape_cast %0 : vector<1x32x256xf32> to vector<32x256xf32>
    %c0_2 = arith.constant 0 : index
    %c0_3 = arith.constant 0 : index
    %2 = vector.load %arg3[%c0_2, %c0_3] : memref<32x128xf32, #tpu.memory_space<vmem>>, vector<32x128xf32>
    %cst = arith.constant dense<0.000000e+00> : vector<256x128xf32>
    %3 = tpu.matmul %1, %2, %cst {dimension_numbers = #tpu.dot_dimension_numbers<[0], [0], [1], [1], [0, 1, 1, 1], [], []>} : vector<32x256xf32>, vector<32x128xf32>, vector<256x128xf32> -> vector<256x128xf32>
    %c0_4 = arith.constant 0 : index
    %c0_5 = arith.constant 0 : index
    %4 = vector.load %arg4[%c0_4, %c0_5] : memref<1x128xf32, #tpu.memory_space<vmem>>, vector<1x128xf32>
    %5 = vector.broadcast %4 : vector<1x128xf32> to vector<256x128xf32>
    %6 = arith.addf %3, %5 : vector<256x128xf32>
    %c0_6 = arith.constant 0 : index
    %c0_7 = arith.constant 0 : index
    %c0_8 = arith.constant 0 : index
    %7 = vector.load %arg5[%c0_6, %c0_7, %c0_8] : memref<1x256x128xf32, #tpu.memory_space<vmem>>, vector<1x256x128xf32>
    %8 = vector.shape_cast %7 : vector<1x256x128xf32> to vector<256x128xf32>
    %9 = vector.shape_cast %6 : vector<256x128xf32> to vector<1x256x128xf32>
    tpu.vector_store %arg5[%c0_6, %c0_7, %c0_8], %9 {strides = array<i32>} : memref<1x256x128xf32, #tpu.memory_space<vmem>>, vector<1x256x128xf32>,
    return
  }
  func.func @transform_0(%arg0: i32, %arg1: i32) -> (i32, i32, i32) {
    %c0_i32 = arith.constant 0 : i32
    %c0_i32_0 = arith.constant 0 : i32
    return %arg0, %c0_i32, %arg1 : i32, i32, i32
  }
  func.func @transform_1(%arg0: i32, %arg1: i32) -> (i32, i32) {
    %c0_i32 = arith.constant 0 : i32
    %c0_i32_0 = arith.constant 0 : i32
    %c0_i32_1 = arith.constant 0 : i32
    return %c0_i32, %c0_i32_0 : i32, i32
  }
  func.func @transform_2(%arg0: i32, %arg1: i32) -> (i32, i32) {
    %c0_i32 = arith.constant 0 : i32
    %c0_i32_0 = arith.constant 0 : i32
    %c0_i32_1 = arith.constant 0 : i32
    return %c0_i32, %c0_i32_0 : i32, i32
  }
  func.func @transform_3(%arg0: i32, %arg1: i32) -> (i32, i32, i32) {
    %c0_i32 = arith.constant 0 : i32
    %c0_i32_0 = arith.constant 0 : i32
    return %arg0, %arg1, %c0_i32 : i32, i32, i32
  }
}

</mosaic_0001>

<bundles_post_ra>
// kernel: mlp_forward.1
= control target key start
LH: loop header
LB: loop body
LE: loop exit
PB: predicated region body
PF: predicated region fallthrough
CT: control target
= control target key end

     0   :  { %8 = vsyncpa [#allocation3], 0  ;;  %s1056_s0 = inlined_call_operand.vmem [shape: f32[2,32,256], index: 0, kind: input, shape index: {}]   ;;  %s1057_s1 = inlined_call_operand.vmem [shape: f32[32,128], index: 1, kind: input, shape index: {}]   ;;  %s1058_s2 = inlined_call_operand.vmem [shape: f32[1,128], index: 2, kind: input, shape index: {}]   ;;  %s1059_s3 = inlined_call_operand.hbm [shape: f32[2,256,128], index: 3, kind: output, shape index: {}]  }
   0x1   :  { %10 = vsyncpa [#allocation3 + $0x1], 0  ;;  %s839_s12 = smov 0   ;;  %s841_s13 = smov 0  }
   0x2   :  { %s843_s14 = smov 0   ;;  %s845_s15 = smov 0  }
   0x3   :  { %s847_s16 = smov 0   ;;  %s849_s17 = smov 0  }
   0x4 LB: > { %s619_s18 = sadd.s32 4294967295, %s815_s17   ;;  %s620_s19 = sadd.s32 4294967294, %s815_s17   ;;  %s815_s17 = sphi %s849_s17, %s16_s17   ;;  %s811_s16 = sphi %s847_s16, %s1066_s16   ;;  %s807_s15 = sphi %s845_s15, %s1065_s15   ;;  %s803_s14 = sphi %s843_s14, %s1064_s14   ;;  %s799_s13 = sphi %s841_s13, %s1063_s13   ;;  %s795_s12 = sphi %s839_s12, %s1062_s12  }
   0x5   : > { %s28_s20 = sadd.s32 1, %s811_s16  ;;  %s107_s21 = sadd.s32 1, %s803_s14 }
   0x6   : > { %p30_p0 = scmp.ge.s32.totalorder %s28_s20, 2  ;;  %p117_p1 = scmp.ne.s32.totalorder %s803_s14, %s799_s13 }
   0x7   : > { %p118_p2 = scmp.eq.s32.totalorder %s619_s18, 1  ;;  %p123_p3 = scmp.ne.s32.totalorder %s799_s13, %s795_s12 }
   0x8   : > { %s1068_s20 = smov (%p30_p0, %s28_s20), 0  ;;  %p124_p5 = scmp.eq.s32.totalorder %s620_s19, 1 }
   0x9   : > { %p879_p4 = por %p118_p2, %p117_p1  ;;  %s102_s23 = ssub.s32 %s811_s16, %s1068_s20 }
   0xa   : > { %p623_p6 = scmp.ge.s32.totalorder %s815_s17, 1  ;;  %p105_p7 = scmp.eq.s32.totalorder %s102_s23, 0 }
   0xb   : > { %p886_p8 = por %p124_p5, %p123_p3  ;;  %p161_p9 = scmp.lt.s32.totalorder %s815_s17, 3 }
   0xc   : > { %s892_s25 = scalar_select %p105_p7, %s803_s14, %s107_s21  }
   0xd   : > { %p162_p10 = pnand %p623_p6, %p161_p9 }
   0xe   : > { %p190_p11 = scmp.lt.s32.totalorder (!%p162_p10), %s807_s15, 1  ;;  %s186_s18 = sand.u32 (!%p162_p10), 1, %s799_s13  }
   0xf   : > { %165 = sbr.rel (%p162_p10) target bundleno = 450 (0x1c2), region = 32  ;;  %s624_s19 = sshll.u32 (!%p162_p10), %s186_s18, 8 }
  0x10   : > { %s952_s26 = scalar_lea.vmem (!%p162_p10), [#allocation2], %s624_s19  ;;  %s665_s27 = sshll.u32 (!%p162_p10), %s807_s15, 8 }
  0x11   : > { %s537_s4 = sshll.u32 (!%p162_p10), %s952_s26, 4  ;;  %s757_s10 = scalar_lea.hbm (!%p162_p10), %s1059_s3, 512  ;;  %s538_s4 = int_to_ptr.vmem [resolvable:$true] %s537_s4 }
  0x14   : > { %v211_v0 = vld [vmem:[%s1057_s1 + $0x18] sm:$0xff]  ;;  %v210_v1 = vld [vmem:[%s1057_s1 + $0x10] sm:$0xff]  ;;  %s191_s30 = scalar_select %p190_p11, %s807_s15, 1  ;;  %v209_v2 = vld [vmem:[%s1057_s1 + $0x8] sm:$0xff]  ;;  %vm280_vm0 = vcmask 261120  }
  0x15   : > { %667 = vmatpush.msra.mxu2 %v211_v0  ;;  %389 = vmatpush.msra.mxu0 %v211_v0  ;;  %v208_v3 = vld [vmem:[%s1057_s1] sm:$0xff]  ;;  %s523_s15 = scalar_lea.sflag [#allocation3], %s186_s18 }
  0x16   : > { %668 = vmatpush.msra.mxu3 %v211_v0  ;;  %666 = vmatpush.msra.mxu1 %v211_v0  ;;  %s664_s6 = sshll.u32 %s191_s30, 6  ;;  %v949_v44 = vld [vmem:[%s1058_s2] ss:$0 sm:$0xff]  ;;  %s536_s30 = scalar_lea.hbm %s1059_s3, %s665_s27 }
  0x17   : > { %670 = vmatpush.msra.mxu2 %v210_v1  ;;  %390 = vmatpush.msra.mxu0 %v210_v1  ;;  %s197_s9 = scalar_lea.vmem %s1056_s0, %s664_s6  ;;  %s539_s5 = sshll.u32 %s536_s30, 4  ;;  %s540_s5 = int_to_ptr.hbm [resolvable:$true] %s539_s5 }
  0x18   : > { %671 = vmatpush.msra.mxu3 %v210_v1  ;;  %669 = vmatpush.msra.mxu1 %v210_v1  ;;  %v201_v4 = vld [vmem:[%s197_s9 + $0x8] sm:$0xff]  ;;  %v200_v5 = vld [vmem:[%s197_s9] sm:$0xff]  ;;  %v203_v6 = vld [vmem:[%s197_s9 + $0x18] sm:$0xff]  ;;  %s751_s6 = sshra.s32 %s540_s5, 4  ;;  %s752_s6 = int_to_ptr.hbm [resolvable:$true] %s751_s6 }
  0x19   : > { %673 = vmatpush.msra.mxu2 %v209_v2  ;;  %391 = vmatpush.msra.mxu0 %v209_v2  ;;  %v202_v7 = vld [vmem:[%s197_s9 + $0x10] sm:$0xff]  ;;  %v205_v8 = vld [vmem:[%s197_s9 + $0x28] sm:$0xff]  ;;  %v204_v9 = vld [vmem:[%s197_s9 + $0x20] sm:$0xff]  ;;  %s753_s7 = scalar_lea.hbm %s752_s6, 256  ;;  %p758_p1 = scmp.lt.s32.totalorder %s752_s6, %s1059_s3 }
  0x1a   : > { %674 = vmatpush.msra.mxu3 %v209_v2  ;;  %672 = vmatpush.msra.mxu1 %v209_v2  ;;  %v207_v10 = vld [vmem:[%s197_s9 + $0x38] sm:$0xff]  ;;  %v206_v11 = vld [vmem:[%s197_s9 + $0x30] sm:$0xff]  ;;  %p754_p12 = scmp.ne.s32.totalorder %s752_s6, %s753_s7  ;;  %p759_p2 = scmp.lt.s32.totalorder %s757_s10, %s753_s7 }
  0x1b   : > { %248 = vxpose.xlu0.b32.start [1/4] (short) %v201_v4, 128  ;;  %216 = vxpose.xlu1.b32.start [1/4] (short) %v200_v5, 128 }
  0x1c   : > { %676 = vmatpush.msra.mxu2 %v208_v3  ;;  %392 = vmatpush.msra.mxu0 %v208_v3  ;;  %p755_p13 = pnand %p754_p12, %p879_p4  ;;  %p760_p3 = por %p759_p2, %p758_p1 }
  0x1d   : > { %677 = vmatpush.msra.mxu3 %v208_v3  ;;  %675 = vmatpush.msra.mxu1 %v208_v3 }
  0x1e   : > { %p756_p0 = pneg %p755_p13 }
  0x20   : > { %p761_p5 = pnand %p760_p3, %p756_p0 }
  0x23   : > { %249 = vxpose.xlu0.b32.cont [2/4] (short) %v203_v6, 128  ;;  %217 = vxpose.xlu1.b32.cont [2/4] (short) %v202_v7, 128 }
  0x2b   : > { %250 = vxpose.xlu0.b32.cont [3/4] (short) %v205_v8, 128  ;;  %218 = vxpose.xlu1.b32.cont [3/4] (short) %v204_v9, 128 }
  0x33   : > { %251 = vxpose.xlu0.b32.end [4/4] (short) %v207_v10, 128  ;;  %219 = vxpose.xlu1.b32.end [4/4] (short) %v206_v11, 128 }
  0xbf   : > { %v264_v12 = vpop.trf.xlu0  ;;  %v232_v13 = vpop.trf.xlu1 }
  0xc0   : > { %643 = vmatmul.msk.f32.vlgmr.msra.gmra.mxu2 %vm280_vm0, %v264_v12  ;;  %627 = vmatmul.msk.f32.vlgmr.msra.gmra.mxu0 %vm280_vm0, %v232_v13 }
  0xc7   : > { %v265_v14 = vpop.trf.xlu0  ;;  %v233_v15 = vpop.trf.xlu1 }
  0xc8   : > { %644 = vmatmul.msk.f32.gmra.mxu2 %vm280_vm0, %v265_v14  ;;  %628 = vmatmul.msk.f32.gmra.mxu0 %vm280_vm0, %v233_v15 }
  0xcf   : > { %v266_v16 = vpop.trf.xlu0  ;;  %v234_v17 = vpop.trf.xlu1 }
  0xd0   : > { %645 = vmatmul.msk.f32.gmra.mxu2 %vm280_vm0, %v266_v16  ;;  %629 = vmatmul.msk.f32.gmra.mxu0 %vm280_vm0, %v234_v17 }
  0xd7   : > { %v267_v18 = vpop.trf.xlu0  ;;  %v235_v19 = vpop.trf.xlu1 }
  0xd8   : > { %646 = vmatmul.msk.f32.gmra.mxu2 %vm280_vm0, %v267_v18  ;;  %630 = vmatmul.msk.f32.gmra.mxu0 %vm280_vm0, %v235_v19 }
  0xdf   : > { %v268_v20 = vpop.trf.xlu0  ;;  %v236_v21 = vpop.trf.xlu1 }
  0xe0   : > { %647 = vmatmul.msk.f32.gmra.mxu2 %vm280_vm0, %v268_v20  ;;  %631 = vmatmul.msk.f32.gmra.mxu0 %vm280_vm0, %v236_v21 }
  0xe7   : > { %v269_v22 = vpop.trf.xlu0  ;;  %v237_v23 = vpop.trf.xlu1 }
  0xe8   : > { %648 = vmatmul.msk.f32.gmra.mxu2 %vm280_vm0, %v269_v22  ;;  %632 = vmatmul.msk.f32.gmra.mxu0 %vm280_vm0, %v237_v23 }
  0xef   : > { %v270_v24 = vpop.trf.xlu0  ;;  %v238_v25 = vpop.trf.xlu1 }
  0xf0   : > { %649 = vmatmul.msk.f32.gmra.mxu2 %vm280_vm0, %v270_v24  ;;  %633 = vmatmul.msk.f32.gmra.mxu0 %vm280_vm0, %v238_v25 }
  0xf7   : > { %v271_v26 = vpop.trf.xlu0  ;;  %v239_v27 = vpop.trf.xlu1 }
  0xf8   : > { %650 = vmatmul.msk.f32.gmra.mxu2 %vm280_vm0, %v271_v26  ;;  %634 = vmatmul.msk.f32.gmra.mxu0 %vm280_vm0, %v239_v27 }
  0xff   : > { %v272_v28 = vpop.trf.xlu0  ;;  %v240_v29 = vpop.trf.xlu1 }
 0x100   : > { %651 = vmatmul.msk.f32.vlgmr.msra.gmra.mxu3 %vm280_vm0, %v272_v28  ;;  %635 = vmatmul.msk.f32.vlgmr.msra.gmra.mxu1 %vm280_vm0, %v240_v29 }
 0x107   : > { %v273_v30 = vpop.trf.xlu0  ;;  %v241_v31 = vpop.trf.xlu1 }
 0x108   : > { %652 = vmatmul.msk.f32.gmra.mxu3 %vm280_vm0, %v273_v30  ;;  %636 = vmatmul.msk.f32.gmra.mxu1 %vm280_vm0, %v241_v31 }
 0x10f   : > { %v274_v32 = vpop.trf.xlu0  ;;  %v242_v33 = vpop.trf.xlu1 }
 0x110   : > { %653 = vmatmul.msk.f32.gmra.mxu3 %vm280_vm0, %v274_v32  ;;  %637 = vmatmul.msk.f32.gmra.mxu1 %vm280_vm0, %v242_v33 }
 0x117   : > { %v275_v34 = vpop.trf.xlu0  ;;  %v243_v35 = vpop.trf.xlu1 }
 0x118   : > { %654 = vmatmul.msk.f32.gmra.mxu3 %vm280_vm0, %v275_v34  ;;  %638 = vmatmul.msk.f32.gmra.mxu1 %vm280_vm0, %v243_v35 }
 0x11f   : > { %v276_v36 = vpop.trf.xlu0  ;;  %v244_v37 = vpop.trf.xlu1 }
 0x120   : > { %655 = vmatmul.msk.f32.gmra.mxu3 %vm280_vm0, %v276_v36  ;;  %639 = vmatmul.msk.f32.gmra.mxu1 %vm280_vm0, %v244_v37 }
 0x127   : > { %v277_v38 = vpop.trf.xlu0  ;;  %v245_v39 = vpop.trf.xlu1 }
 0x128   : > { %656 = vmatmul.msk.f32.gmra.mxu3 %vm280_vm0, %v277_v38  ;;  %640 = vmatmul.msk.f32.gmra.mxu1 %vm280_vm0, %v245_v39 }
 0x12f   : > { %v278_v40 = vpop.trf.xlu0  ;;  %v246_v41 = vpop.trf.xlu1 }
 0x130   : > { %657 = vmatmul.msk.f32.gmra.mxu3 %vm280_vm0, %v278_v40  ;;  %641 = vmatmul.msk.f32.gmra.mxu1 %vm280_vm0, %v246_v41 }
 0x137   : > { %v279_v42 = vpop.trf.xlu0  ;;  %v247_v43 = vpop.trf.xlu1 }
 0x138   : > { %658 = vmatmul.msk.f32.gmra.mxu3 %vm280_vm0, %v279_v42  ;;  %642 = vmatmul.msk.f32.gmra.mxu1 %vm280_vm0, %v247_v43 }
 0x13d   : > { %v394_v45 = vpop.f32.mrf.mxu0 }
 0x13e   : > { %v395_v46 = vadd.f32 %v949_v44, %v394_v45 }
 0x140   : > { %490 = vst [vmem:[%s952_s26] sm:$0xff] %v395_v46 }
 0x143   : > { %v442_v47 = vpop.f32.mrf.mxu2 }
 0x144   : > { %v443_v48 = vadd.f32 %v949_v44, %v442_v47 }
 0x145   : > { %v397_v49 = vpop.f32.mrf.mxu0 }
 0x146   : > { %506 = vst [vmem:[%s952_s26 + $0x80] sm:$0xff] %v443_v48  ;;  %v398_v50 = vadd.f32 %v949_v44, %v397_v49 }
 0x148   : > { %491 = vst [vmem:[%s952_s26 + $0x8] sm:$0xff] %v398_v50 }
 0x14b   : > { %v445_v51 = vpop.f32.mrf.mxu2 }
 0x14c   : > { %v446_v52 = vadd.f32 %v949_v44, %v445_v51 }
 0x14d   : > { %v400_v53 = vpop.f32.mrf.mxu0 }
 0x14e   : > { %507 = vst [vmem:[%s952_s26 + $0x88] sm:$0xff] %v446_v52  ;;  %v401_v54 = vadd.f32 %v949_v44, %v400_v53 }
 0x150   : > { %492 = vst [vmem:[%s952_s26 + $0x10] sm:$0xff] %v401_v54 }
 0x153   : > { %v448_v55 = vpop.f32.mrf.mxu2 }
 0x154   : > { %v449_v56 = vadd.f32 %v949_v44, %v448_v55 }
 0x155   : > { %v403_v57 = vpop.f32.mrf.mxu0 }
 0x156   : > { %508 = vst [vmem:[%s952_s26 + $0x90] sm:$0xff] %v449_v56  ;;  %v404_v58 = vadd.f32 %v949_v44, %v403_v57 }
 0x158   : > { %493 = vst [vmem:[%s952_s26 + $0x18] sm:$0xff] %v404_v58 }
 0x15b   : > { %v451_v59 = vpop.f32.mrf.mxu2 }
 0x15c   : > { %v452_v60 = vadd.f32 %v949_v44, %v451_v59 }
 0x15d   : > { %v406_v61 = vpop.f32.mrf.mxu0 }
 0x15e   : > { %509 = vst [vmem:[%s952_s26 + $0x98] sm:$0xff] %v452_v60  ;;  %v407_v62 = vadd.f32 %v949_v44, %v406_v61 }
 0x160   : > { %494 = vst [vmem:[%s952_s26 + $0x20] sm:$0xff] %v407_v62 }
 0x163   : > { %v454_v63 = vpop.f32.mrf.mxu2 }
 0x164   : > { %v455_v0 = vadd.f32 %v949_v44, %v454_v63 }
 0x165   : > { %v409_v1 = vpop.f32.mrf.mxu0 }
 0x166   : > { %510 = vst [vmem:[%s952_s26 + $0xa0] sm:$0xff] %v455_v0  ;;  %v410_v2 = vadd.f32 %v949_v44, %v409_v1 }
 0x168   : > { %495 = vst [vmem:[%s952_s26 + $0x28] sm:$0xff] %v410_v2 }
 0x16b   : > { %v457_v3 = vpop.f32.mrf.mxu2 }
 0x16c   : > { %v458_v4 = vadd.f32 %v949_v44, %v457_v3 }
 0x16d   : > { %v412_v5 = vpop.f32.mrf.mxu0 }
 0x16e   : > { %511 = vst [vmem:[%s952_s26 + $0xa8] sm:$0xff] %v458_v4  ;;  %v413_v6 = vadd.f32 %v949_v44, %v412_v5 }
 0x170   : > { %496 = vst [vmem:[%s952_s26 + $0x30] sm:$0xff] %v413_v6 }
 0x173   : > { %v460_v7 = vpop.f32.mrf.mxu2 }
 0x174   : > { %v461_v8 = vadd.f32 %v949_v44, %v460_v7 }
 0x175   : > { %v415_v9 = vpop.f32.mrf.mxu0 }
 0x176   : > { %512 = vst [vmem:[%s952_s26 + $0xb0] sm:$0xff] %v461_v8  ;;  %v416_v10 = vadd.f32 %v949_v44, %v415_v9 }
 0x178   : > { %497 = vst [vmem:[%s952_s26 + $0x38] sm:$0xff] %v416_v10 }
 0x17b   : > { %v463_v11 = vpop.f32.mrf.mxu2 }
 0x17c   : > { %v464_v12 = vadd.f32 %v949_v44, %v463_v11 }
 0x17d   : > { %v418_v13 = vpop.f32.mrf.mxu1 }
 0x17e   : > { %513 = vst [vmem:[%s952_s26 + $0xb8] sm:$0xff] %v464_v12  ;;  %v419_v14 = vadd.f32 %v949_v44, %v418_v13 }
 0x180   : > { %498 = vst [vmem:[%s952_s26 + $0x40] sm:$0xff] %v419_v14 }
 0x183   : > { %v466_v15 = vpop.f32.mrf.mxu3 }
 0x184   : > { %v467_v16 = vadd.f32 %v949_v44, %v466_v15 }
 0x185   : > { %v421_v17 = vpop.f32.mrf.mxu1 }
 0x186   : > { %514 = vst [vmem:[%s952_s26 + $0xc0] sm:$0xff] %v467_v16  ;;  %v422_v18 = vadd.f32 %v949_v44, %v421_v17 }
 0x188   : > { %499 = vst [vmem:[%s952_s26 + $0x48] sm:$0xff] %v422_v18 }
 0x18b   : > { %v469_v19 = vpop.f32.mrf.mxu3 }
 0x18c   : > { %v470_v20 = vadd.f32 %v949_v44, %v469_v19 }
 0x18d   : > { %v424_v21 = vpop.f32.mrf.mxu1 }
 0x18e   : > { %515 = vst [vmem:[%s952_s26 + $0xc8] sm:$0xff] %v470_v20  ;;  %v425_v22 = vadd.f32 %v949_v44, %v424_v21 }
 0x190   : > { %500 = vst [vmem:[%s952_s26 + $0x50] sm:$0xff] %v425_v22 }
 0x193   : > { %v472_v23 = vpop.f32.mrf.mxu3 }
 0x194   : > { %v473_v24 = vadd.f32 %v949_v44, %v472_v23 }
 0x195   : > { %v427_v25 = vpop.f32.mrf.mxu1 }
 0x196   : > { %516 = vst [vmem:[%s952_s26 + $0xd0] sm:$0xff] %v473_v24  ;;  %v428_v26 = vadd.f32 %v949_v44, %v427_v25 }
 0x198   : > { %501 = vst [vmem:[%s952_s26 + $0x58] sm:$0xff] %v428_v26 }
 0x19b   : > { %v475_v27 = vpop.f32.mrf.mxu3 }
 0x19c   : > { %v476_v28 = vadd.f32 %v949_v44, %v475_v27 }
 0x19d   : > { %v430_v29 = vpop.f32.mrf.mxu1 }
 0x19e   : > { %517 = vst [vmem:[%s952_s26 + $0xd8] sm:$0xff] %v476_v28  ;;  %v431_v30 = vadd.f32 %v949_v44, %v430_v29 }
 0x1a0   : > { %502 = vst [vmem:[%s952_s26 + $0x60] sm:$0xff] %v431_v30 }
 0x1a3   : > { %v478_v31 = vpop.f32.mrf.mxu3 }
 0x1a4   : > { %v479_v32 = vadd.f32 %v949_v44, %v478_v31 }
 0x1a5   : > { %v433_v33 = vpop.f32.mrf.mxu1 }
 0x1a6   : > { %518 = vst [vmem:[%s952_s26 + $0xe0] sm:$0xff] %v479_v32  ;;  %v434_v34 = vadd.f32 %v949_v44, %v433_v33 }
 0x1a8   : > { %503 = vst [vmem:[%s952_s26 + $0x68] sm:$0xff] %v434_v34 }
 0x1ab   : > { %v481_v35 = vpop.f32.mrf.mxu3 }
 0x1ac   : > { %v482_v36 = vadd.f32 %v949_v44, %v481_v35 }
 0x1ad   : > { %v436_v37 = vpop.f32.mrf.mxu1 }
 0x1ae   : > { %519 = vst [vmem:[%s952_s26 + $0xe8] sm:$0xff] %v482_v36  ;;  %v437_v38 = vadd.f32 %v949_v44, %v436_v37 }
 0x1b0   : > { %504 = vst [vmem:[%s952_s26 + $0x70] sm:$0xff] %v437_v38 }
 0x1b3   : > { %v484_v39 = vpop.f32.mrf.mxu3 }
 0x1b4   : > { %v485_v40 = vadd.f32 %v949_v44, %v484_v39 }
 0x1b5   : > { %v439_v41 = vpop.f32.mrf.mxu1 }
 0x1b6   : > { %520 = vst [vmem:[%s952_s26 + $0xf0] sm:$0xff] %v485_v40  ;;  %v440_v42 = vadd.f32 %v949_v44, %v439_v41 }
 0x1b8   : > { %505 = vst [vmem:[%s952_s26 + $0x78] sm:$0xff] %v440_v42 }
 0x1bb   : > { %v487_v43 = vpop.f32.mrf.mxu3 }
 0x1bc   : > { %v488_v45 = vadd.f32 %v949_v44, %v487_v43 }
 0x1be   : > { %521 = vst [vmem:[%s952_s26 + $0xf8] sm:$0xff] %v488_v45 }
 0x1bf   : > { %764 = shalt.err (!%p761_p5)
}
 0x1c0   : > { %s817_s18 = smov 128   ;;  %s818_s21 = smov 8  }
 0x1c1   : > { %678 = dma.vmem_to_hbm [thread:$0]  (%p879_p4), %s538_s4, 4096, %s540_s5, %s523_s15, %s817_s18, %s817_s18, %s818_s21  }
 0x1c2 PF: > { %p684_p6 = scmp.ge.s32.totalorder %s815_s17, 2  ;;  %s554_s23 = sand.u32 1, %s795_s12  }
 0x1c3   : > { %s555_s26 = scalar_lea.sflag [#allocation3], %s554_s23 }
 0x1c4   : > { %p681_p7 = pnand %p684_p6, %p886_p8 }
 0x1c6   : > { %p682_p9 = pneg %p681_p7 }
 0x1c8   : > { %790 = dma.done.wait (%p682_p9), %s555_s26, 4096  }
 0x1c9   : > { %792 = vsyncadd (%p682_p9), %s555_s26, 4294963200  ;;  %s16_s17 = sadd.s32 1, %s815_s17   ;;  %s1062_s12 = smov %s799_s13 }
 0x1ca   : > { %p13_p10 = scmp.ge.s32.totalorder %s16_s17, 4   ;;  %s1063_s13 = smov %s803_s14 }
 0x1cb   : > { %s1064_s14 = smov %s892_s25  ;;  %s1065_s15 = smov %s811_s16 }
 0x1cc   : > { %s1066_s16 = smov %s1068_s20  ;;  %15 = sbr.rel (!%p13_p10) target bundleno = 4 (0x4), region = 67 }
 0x1d1   :  { %561 = vsyncpa [#allocation3], 1 }
 0x1d2   :  { %563 = vsyncpa [#allocation3 + $0x1], 1 }

</bundles_post_ra>
